<compile_context>
chip_gen: v5e
topology: v5e:2x2
jax: 0.10.0
libtpu: 0.0.40
codegen_flags: <defaults>
</compile_context>

<pallas_src>
import functools

import jax
import jax.numpy as jnp
import numpy as np
from jax import lax
from jax.experimental import pallas as pl
from jax.experimental.pallas import tpu as pltpu


# ---------------------------------------------------------------------------
# Kernels
# ---------------------------------------------------------------------------

def _scores_kernel(h_ref, w1_ref, b1_ref, w2_ref, o_ref, *, cast_dtype):
    """scores[r] = tanh(h[r] @ W1^T + b1) . w2  for each row of the tile."""
    x = h_ref[...]
    if cast_dtype is not None:
        x = x.astype(cast_dtype)            # in-register cast, no extra HBM pass
    # x @ W1^T (NT form, no transposed weight copy); f32 accumulation on MXU.
    proj = lax.dot_general(
        x, w1_ref[...],
        dimension_numbers=(((1,), (1,)), ((), ())),
        preferred_element_type=jnp.float32)                 # (RT, D) f32
    a = jnp.tanh(proj + b1_ref[...])                        # (RT, D) f32
    # ws2 projection as VPU multiply + XLU lane-reduce; overlaps with MXU work.
    o_ref[...] = jnp.sum(a * w2_ref[...], axis=-1, keepdims=True)   # (RT, 1)


def _softmax_body(scores, mask, o_ref, approx):
    if mask is not None:
        scores = scores + jnp.where(mask == 0.0, -10000.0, 0.0)
    scores = scores - jnp.max(scores, axis=-1, keepdims=True)
    e = jnp.exp(scores)
    inv = pl.reciprocal(jnp.sum(e, axis=-1, keepdims=True), approx=approx)
    o_ref[...] = (e * inv).astype(o_ref.dtype)


def _softmax_kernel(s_ref, o_ref, *, approx):
    _softmax_body(s_ref[...], None, o_ref, approx)


def _softmax_kernel_masked(s_ref, m_ref, o_ref, *, approx):
    _softmax_body(s_ref[...], m_ref[...], o_ref, approx)


# ---------------------------------------------------------------------------
# Tiling helpers
# ---------------------------------------------------------------------------

def _divisors(n):
    ds = set()
    i = 1
    while i * i <= n:
        if n % i == 0:
            ds.add(i)
            ds.add(n // i)
        i += 1
    return ds


def _vmem_capacity_bytes():
    try:
        return int(pltpu.get_tpu_info().vmem_capacity_bytes)
    except Exception:
        return 64 * 1024 * 1024          # conservative (v7x-sized) fallback


def _choose_row_tile(total_rows, d, in_itemsize, w_itemsize, budget_bytes,
                     max_rows=8192):
    """Largest legal row tile under the VMEM budget, preferring >= 2 grid steps."""
    legal = sorted(r for r in _divisors(total_rows)
                   if r % 8 == 0 or r == total_rows)

    def vmem_cost(r):
        out_pad = ((r + 7) // 8) * 8 * 128 * 4          # (r,1) f32 block, lane-padded
        return (2 * r * d * in_itemsize                 # double-buffered hidden block
                + r * d * (w_itemsize + 8)              # in-register cast + proj/tanh f32
                + 2 * (d * d * w_itemsize + 2 * d * 4)  # W1/b1/w2, double-buffered
                + 2 * out_pad)                          # double-buffered out block

    for need_multi_step in (True, False):               # >= 2 steps -> v7x dual-TC
        best = None
        for r in legal:
            if r > max_rows:
                continue
            if need_multi_step and total_rows // r < 2:
                continue
            if vmem_cost(r) <= budget_bytes and (best is None or r > best):
                best = r
        if best is not None:
            return best
    # Nothing fits the budget (pathological shapes): smallest legal tile.
    # TODO(synk): pad B*S up to a multiple of 8 for huge, 8-unaligned inputs.
    return min(legal)


def _choose_batch_tile(batch, seq, max_elems=1 << 20):
    legal = sorted(b for b in _divisors(batch) if b % 8 == 0 or b == batch)
    best = None
    for b in legal:
        if b * seq <= max_elems and (best is None or b > best):
            best = b
    return best if best is not None else min(legal)


# ---------------------------------------------------------------------------
# Wrapper
# ---------------------------------------------------------------------------

def additive_self_attention(hidden_embeds, w1, b1, w2, context_mask=None,
                            mxu_dtype=jnp.bfloat16, approx_reciprocal=False):
    """Forward pass of AdditiveSelfAttention (eval mode).

    hidden_embeds: (B, S, D) or (S, D); w1: (D, D); b1: (D,); w2: (1, D)/(D,).
    context_mask: optional (B, S) / (S,); positions where mask == 0 get -10000.
    Returns f32 attention weights of shape (B, 1, S).

    mxu_dtype: dtype the W1 matmul runs in on the MXU (default bfloat16; the
      cast happens in-register inside the kernel -- hidden is read from HBM in
      its original dtype).  Pass jnp.float32 (or None) for a full-f32 matmul.
      NOTE: bf16 is a documented deviation from the f32 torch module
      (~1e-2-level differences); accumulation / tanh / softmax stay f32.
    """
    hidden_embeds = jnp.asarray(hidden_embeds)
    if hidden_embeds.ndim == 2:                 # mirrors the torch unsqueeze path
        hidden_embeds = hidden_embeds[None]
        if context_mask is not None:
            context_mask = jnp.asarray(context_mask)
            if context_mask.ndim == 1:
                context_mask = context_mask[None]
    B, S, D = hidden_embeds.shape
    total_rows = B * S

    in_dtype = hidden_embeds.dtype
    dot_dtype = jnp.dtype(mxu_dtype) if mxu_dtype is not None else jnp.dtype(in_dtype)
    cast_dtype = dot_dtype if dot_dtype != jnp.dtype(in_dtype) else None

    vmem_cap = _vmem_capacity_bytes()
    budget = int(vmem_cap * 0.60)               # headroom for compiler scratch
    RT = _choose_row_tile(total_rows, D, jnp.dtype(in_dtype).itemsize,
                          dot_dtype.itemsize, budget)
    n_tiles = total_rows // RT

    # Wrapper-side ops are free metadata reshapes; only the tiny weights are
    # cast here (hidden is cast in-register inside the kernel).
    h2d = hidden_embeds.reshape(total_rows, D)
    w1c = jnp.asarray(w1).astype(dot_dtype)
    b1r = jnp.asarray(b1, jnp.float32).reshape(1, D)
    w2r = jnp.asarray(w2, jnp.float32).reshape(1, D)

    cost = pl.CostEstimate(
        flops=2 * total_rows * D * D + 2 * total_rows * D,
        transcendentals=total_rows * D,                       # tanh
        bytes_accessed=(total_rows * D * jnp.dtype(in_dtype).itemsize
                        + D * D * dot_dtype.itemsize + 2 * D * 4
                        + total_rows * 4),
    )

    # Stage 1: per-row scores.  (pl.Buffered(3) on the hidden spec is cheap
    # insurance on 128 MiB parts if a trace still shows exposed DMA.)
    scores = pl.pallas_call(
        functools.partial(_scores_kernel, cast_dtype=cast_dtype),
        out_shape=jax.ShapeDtypeStruct((total_rows, 1), jnp.float32),
        grid=(n_tiles,),
        in_specs=[
            pl.BlockSpec((RT, D), lambda i: (i, 0)),     # hidden row tile
            pl.BlockSpec((D, D), lambda i: (0, 0)),      # W1 (resident)
            pl.BlockSpec((1, D), lambda i: (0, 0)),      # b1
            pl.BlockSpec((1, D), lambda i: (0, 0)),      # w2
        ],
        out_specs=pl.BlockSpec((RT, 1), lambda i: (i, 0)),
        compiler_params=pltpu.CompilerParams(
            dimension_semantics=("parallel",),
            vmem_limit_bytes=int(vmem_cap * 0.75),
        ),
        cost_estimate=cost,
    )(h2d, w1c, b1r, w2r)

    # Stage 2: per-batch masked softmax, vectorized over (TBB, S) blocks.
    scores_2d = scores.reshape(B, S)                     # free metadata reshape
    TBB = _choose_batch_tile(B, S)
    in_specs = [pl.BlockSpec((TBB, S), lambda i: (i, 0))]
    args = [scores_2d]
    if context_mask is not None:
        mask_2d = jnp.asarray(context_mask).astype(jnp.float32).reshape(B, S)
        in_specs.append(pl.BlockSpec((TBB, S), lambda i: (i, 0)))
        args.append(mask_2d)
        kernel = functools.partial(_softmax_kernel_masked, approx=approx_reciprocal)
    else:
        kernel = functools.partial(_softmax_kernel, approx=approx_reciprocal)

    attn = pl.pallas_call(
        kernel,
        out_shape=jax.ShapeDtypeStruct((B, S), jnp.float32),
        grid=(B // TBB,),
        in_specs=in_specs,
        out_specs=pl.BlockSpec((TBB, S), lambda i: (i, 0)),
        compiler_params=pltpu.CompilerParams(dimension_semantics=("parallel",)),
    )(*args)

    # (B, S) -> (B, 1, S): pure metadata reshape, no transpose / HBM round trip.
    return attn.reshape(B, 1, S)


# ---------------------------------------------------------------------------
# Reference + self-test
# ---------------------------------------------------------------------------

def _reference(hidden, w1, b1, w2, context_mask=None):
    with jax.default_matmul_precision("highest"):
        a = jnp.tanh(hidden @ w1.T + b1)
        scores = jnp.squeeze(a @ w2.T, -1)
        if context_mask is not None:
            scores = scores + (-10000.0) * (context_mask == 0).astype(jnp.float32)
        return jax.nn.softmax(scores, axis=1)[:, None, :]


def _xavier_uniform(key, shape):
    fan_out, fan_in = shape
    bound = float(np.sqrt(6.0 / (fan_in + fan_out)))
    return jax.random.uniform(key, shape, dtype=jnp.float32,
                              minval=-bound, maxval=bound)


if __name__ == "__main__":
    key = jax.random.PRNGKey(0)
    k_h, k_w1, k_w2, k_h2 = jax.random.split(key, 4)

    # --- shape 1: small, masked, default bf16 MXU path ----------------------
    B, S, D = 4, 16, 32
    hidden = jax.random.normal(k_h, (B, S, D), dtype=jnp.float32)
    w1 = _xavier_uniform(k_w1, (D, D))            # ws1.weight (out, in)
    b1 = jnp.zeros((D,), jnp.float32)             # ws1.bias filled with 0
    w2 = _xavier_uniform(k_w2, (1, D))            # ws2.weight (1, in), no bias
    mask = jnp.ones((B, S), jnp.float32)
    mask = mask.at[1, -3:].set(0.0)
    mask = mask.at[3, :5].set(0.0)

    attn = jax.block_until_ready(
        additive_self_attention(hidden, w1, b1, w2, context_mask=mask))
    assert attn.shape == (B, 1, S)
    np.testing.assert_allclose(np.asarray(jnp.sum(attn, axis=-1)),
                               np.ones((B, 1)), atol=1e-5, rtol=0)
    assert float(jnp.max(attn[1, 0, -3:])) < 1e-4
    assert float(jnp.max(attn[3, 0, :5])) < 1e-4
    np.testing.assert_allclose(
        np.asarray(attn), np.asarray(_reference(hidden, w1, b1, w2, mask)),
        atol=2e-2, rtol=0)

    # --- shape 1, no mask, f32 MXU path (tight numerical check) -------------
    attn32 = jax.block_until_ready(
        additive_self_attention(hidden, w1, b1, w2, mxu_dtype=jnp.float32))
    assert attn32.shape == (B, 1, S)
    np.testing.assert_allclose(
        np.asarray(attn32), np.asarray(_reference(hidden, w1, b1, w2)),
        atol=1e-3, rtol=0)

    # --- shape 2: larger tiles / multi-step grid smoke test ------------------
    B2, S2, D2 = 8, 128, 128
    k_w1b, k_w2b = jax.random.split(k_w2)
    hidden2 = jax.random.normal(k_h2, (B2, S2, D2), dtype=jnp.float32)
    w1b = _xavier_uniform(k_w1b, (D2, D2))
    b1b = jnp.zeros((D2,), jnp.float32)
    w2b = _xavier_uniform(k_w2b, (1, D2))
    mask2 = jnp.ones((B2, S2), jnp.float32).at[0, 64:].set(0.0)

    attn2 = jax.block_until_ready(
        additive_self_attention(hidden2, w1b, b1b, w2b, context_mask=mask2))
    assert attn2.shape == (B2, 1, S2)
    np.testing.assert_allclose(np.asarray(jnp.sum(attn2, axis=-1)),
                               np.ones((B2, 1)), atol=1e-5, rtol=0)
    np.testing.assert_allclose(
        np.asarray(attn2),
        np.asarray(_reference(hidden2, w1b, b1b, w2b, mask2)),
        atol=2e-2, rtol=0)

    print("KERNEL_OK")
</pallas_src>

<mosaic_0001>
module attributes {stable_mosaic.version = 11 : i64} {
  func.func @_scores_kernel(%arg0: i32, %arg1: memref<32x32xf32, #tpu.memory_space<vmem>>, %arg2: memref<32x32xbf16, #tpu.memory_space<vmem>>, %arg3: memref<1x32xf32, #tpu.memory_space<vmem>>, %arg4: memref<1x32xf32, #tpu.memory_space<vmem>>, %arg5: memref<32x1xf32, #tpu.memory_space<vmem>>) attributes {dimension_semantics = [#tpu.dimension_semantics<parallel>], iteration_bounds = array<i64: 2>, scalar_prefetch = 0 : i64, scratch_operands = 0 : i64, tpu.core_type = #tpu.core_type<tc>, window_params = [{transform_indices = @transform_0, window_bounds = array<i64: 32, 32>}, {pipeline_mode = #tpu.pipeline_mode<synchronous>, transform_indices = @transform_1, window_bounds = array<i64: 32, 32>}, {pipeline_mode = #tpu.pipeline_mode<synchronous>, transform_indices = @transform_2, window_bounds = array<i64: 1, 32>}, {pipeline_mode = #tpu.pipeline_mode<synchronous>, transform_indices = @transform_3, window_bounds = array<i64: 1, 32>}, {transform_indices = @transform_4, window_bounds = array<i64: 32, 1>}]} {
    %c0 = arith.constant 0 : index
    %c0_0 = arith.constant 0 : index
    %0 = vector.load %arg1[%c0, %c0_0] : memref<32x32xf32, #tpu.memory_space<vmem>>, vector<32x32xf32>
    %1 = arith.truncf %0 : vector<32x32xf32> to vector<32x32xbf16>
    %c0_1 = arith.constant 0 : index
    %c0_2 = arith.constant 0 : index
    %2 = vector.load %arg2[%c0_1, %c0_2] : memref<32x32xbf16, #tpu.memory_space<vmem>>, vector<32x32xbf16>
    %cst = arith.constant dense<0.000000e+00> : vector<32x32xf32>
    %3 = tpu.matmul %1, %2, %cst {dimension_numbers = #tpu.dot_dimension_numbers<[1], [1], [0], [0], [0, 0, 1, 0], [], []>} : vector<32x32xbf16>, vector<32x32xbf16>, vector<32x32xf32> -> vector<32x32xf32>
    %c0_3 = arith.constant 0 : index
    %c0_4 = arith.constant 0 : index
    %4 = vector.load %arg3[%c0_3, %c0_4] : memref<1x32xf32, #tpu.memory_space<vmem>>, vector<1x32xf32>
    %5 = vector.broadcast %4 : vector<1x32xf32> to vector<32x32xf32>
    %6 = arith.addf %3, %5 : vector<32x32xf32>
    %7 = math.tanh %6 : vector<32x32xf32>
    %c0_5 = arith.constant 0 : index
    %c0_6 = arith.constant 0 : index
    %8 = vector.load %arg4[%c0_5, %c0_6] : memref<1x32xf32, #tpu.memory_space<vmem>>, vector<1x32xf32>
    %9 = vector.broadcast %8 : vector<1x32xf32> to vector<32x32xf32>
    %10 = arith.mulf %7, %9 : vector<32x32xf32>
    %cst_7 = arith.constant dense<0.000000e+00> : vector<32xf32>
    %11 = vector.multi_reduction <add>, %10, %cst_7 [1] : vector<32x32xf32> to vector<32xf32>
    %12 = vector.shape_cast %11 : vector<32xf32> to vector<32x1xf32>
    %c0_8 = arith.constant 0 : index
    %c0_9 = arith.constant 0 : index
    %13 = vector.load %arg5[%c0_8, %c0_9] : memref<32x1xf32, #tpu.memory_space<vmem>>, vector<32x1xf32>
    tpu.vector_store %arg5[%c0_8, %c0_9], %12 {strides = array<i32>} : memref<32x1xf32, #tpu.memory_space<vmem>>, vector<32x1xf32>,
    return
  }
  func.func @transform_0(%arg0: i32) -> (i32, i32) {
    %c0_i32 = arith.constant 0 : i32
    %c0_i32_0 = arith.constant 0 : i32
    return %arg0, %c0_i32 : i32, i32
  }
  func.func @transform_1(%arg0: i32) -> (i32, i32) {
    %c0_i32 = arith.constant 0 : i32
    %c0_i32_0 = arith.constant 0 : i32
    %c0_i32_1 = arith.constant 0 : i32
    return %c0_i32, %c0_i32_0 : i32, i32
  }
  func.func @transform_2(%arg0: i32) -> (i32, i32) {
    %c0_i32 = arith.constant 0 : i32
    %c0_i32_0 = arith.constant 0 : i32
    %c0_i32_1 = arith.constant 0 : i32
    return %c0_i32, %c0_i32_0 : i32, i32
  }
  func.func @transform_3(%arg0: i32) -> (i32, i32) {
    %c0_i32 = arith.constant 0 : i32
    %c0_i32_0 = arith.constant 0 : i32
    %c0_i32_1 = arith.constant 0 : i32
    return %c0_i32, %c0_i32_0 : i32, i32
  }
  func.func @transform_4(%arg0: i32) -> (i32, i32) {
    %c0_i32 = arith.constant 0 : i32
    %c0_i32_0 = arith.constant 0 : i32
    return %arg0, %c0_i32 : i32, i32
  }
}

</mosaic_0001>

<bundles_post_ra>
// kernel: tpu_custom_call.1
= control target key start
LH: loop header
LB: loop body
LE: loop exit
PB: predicated region body
PF: predicated region fallthrough
CT: control target
= control target key end

     0   :  { %s419_s15 = smov 0   ;;  %s463_s0 = inlined_call_operand.vmem [shape: f32[64,32], index: 0, kind: input, shape index: {}]   ;;  %s464_s1 = inlined_call_operand.vmem [shape: bf16[32,32], index: 1, kind: input, shape index: {}]   ;;  %s465_s2 = inlined_call_operand.vmem [shape: f32[1,32], index: 2, kind: input, shape index: {}]   ;;  %s466_s3 = inlined_call_operand.vmem [shape: f32[1,32], index: 3, kind: input, shape index: {}]   ;;  %s467_s4 = inlined_call_operand.vmem [shape: f32[64,1], index: 4, kind: output, shape index: {}]  }
   0x1 LB: > { %s343_s16 = sadd.s32 4294967295, %s392_s15   ;;  %p347_p0 = scmp.ge.s32.totalorder %s392_s15, 1  ;;  %s392_s15 = sphi %s419_s15, %s14_s15  }
   0x2   : > { %p163_p1 = scmp.lt.s32.totalorder %s392_s15, 3 }
   0x4   : > { %p164_p2 = pnand %p347_p0, %p163_p1 }
   0x5   : > { %s348_s19 = sshll.u32 (!%p164_p2), %s343_s16, 2 }
   0x6   : > { %167 = sbr.rel (%p164_p2) target bundleno = 292 (0x124), region = 36  ;;  %p190_p3 = scmp.lt.s32.totalorder (!%p164_p2), %s348_s19, 7 }
   0xb   : > { %v365_v0 = vld [vmem:[%s464_s1 + $0x8] sm:$0xff]  ;;  %vm226_vm0 = vcmask 261120   ;;  %s469_s19 = smov (!%p190_p3, %s348_s19), 7  ;;  %v364_v2 = vld [vmem:[%s464_s1] sm:$0xff]  ;;  %vm282_vm1 = vcmask 7168  }
   0xc   : > { %v237_v1 = vsel %vm226_vm0, %v365_v0, 0  ;;  %s349_s22 = sshll.u32 %s469_s19, 3  ;;  %v234_v3 = vsel %vm226_vm0, %v364_v2, 0  ;;  %v376_v10 = vld [vmem:[%s465_s2] ss:$0 sm:$0xff] }
   0xd   : > { %245 = vmatpush.bf16.xpose.msra.mxu0 %v237_v1  ;;  %366 = vmatpush.bf16.xpose.msra.mxu1 %v237_v1  ;;  %s193_s25 = scalar_lea.vmem %s463_s0, %s349_s22  ;;  %v377_v15 = vld [vmem:[%s466_s3] ss:$0 sm:$0xff]  ;;  %s199_s6 = scalar_lea.vmem %s467_s4, %s349_s22 }
   0xe   : > { %v202_v4 = vld [vmem:[%s193_s25] sm:$0xff]  ;;  %v203_v5 = vld [vmem:[%s193_s25 + $0x8] sm:$0xff]  ;;  %v204_v6 = vld [vmem:[%s193_s25 + $0x10] sm:$0xff] }
   0xf   : > { %v205_v7 = vld [vmem:[%s193_s25 + $0x18] sm:$0xff]  ;;  %v206_v8 = vpack.c.bf16 %v203_v5, %v202_v4 }
  0x10   : > { %v207_v9 = vpack.c.bf16 %v205_v7, %v204_v6 }
  0x15   : > { %246 = vmatpush.bf16.xpose.msra.mxu0 %v234_v3  ;;  %367 = vmatpush.bf16.xpose.msra.mxu1 %v234_v3 }
  0x1c   : > { %360 = vmatmul.msk.bf16.vlgmr.msra.gmra.mxu0 %vm226_vm0, %v206_v8  ;;  %361 = vmatmul.msk.bf16.vlgmr.msra.gmra.mxu1 %vm226_vm0, %v207_v9 }
  0x99   : > { %v248_v11 = vpop.f32.mrf.mxu0  ;;  %v253_v12 = vpop.f32.mrf.mxu1 }
  0x9a   : > { %v249_v13 = vadd.f32 %v376_v10, %v248_v11  ;;  %v254_v14 = vadd.f32 %v376_v10, %v253_v12 }
  0x9c   : > { %378 = vtanh.f32 %v249_v13 }
  0x9d   : > { %380 = vtanh.f32 %v254_v14 }
  0xa1   : > { %v250_v16 = vpop.f32.mrf.mxu0  ;;  %v255_v17 = vpop.f32.mrf.mxu1 }
  0xa2   : > { %v379_v18 = vpop.eup %378  ;;  %v251_v19 = vadd.f32 %v376_v10, %v250_v16  ;;  %v256_v20 = vadd.f32 %v376_v10, %v255_v17 }
  0xa3   : > { %v381_v21 = vpop.eup %380  ;;  %v266_v22 = vmul.f32 %v379_v18, %v377_v15 }
  0xa4   : > { %382 = vtanh.f32 %v251_v19  ;;  %v268_v23 = vmul.f32 %v381_v21, %v377_v15 }
  0xa5   : > { %384 = vtanh.f32 %v256_v20  ;;  %v270_v24 = vsel %vm226_vm0, %v266_v22, 0.0 }
  0xa6   : > { %v276_v25 = vsel %vm226_vm0, %v268_v23, 0.0  ;;  %271 = vadd.xlane.f32.xlu0 %v270_v24 }
  0xa7   : > { %277 = vadd.xlane.f32.xlu1 %v276_v25 }
  0xaa   : > { %v383_v26 = vpop.eup %382 }
  0xab   : > { %v385_v27 = vpop.eup %384  ;;  %v267_v28 = vmul.f32 %v383_v26, %v377_v15 }
  0xac   : > { %v269_v29 = vmul.f32 %v385_v27, %v377_v15 }
  0xad   : > { %v273_v30 = vsel %vm226_vm0, %v267_v28, 0.0 }
  0xae   : > { %v279_v31 = vsel %vm226_vm0, %v269_v29, 0.0  ;;  %274 = vadd.xlane.f32.xlu0 %v273_v30 }
  0xaf   : > { %280 = vadd.xlane.f32.xlu1 %v279_v31 }
 0x119   : > { %v272_v32 = vpop.xlane.xlu0 %271 }
 0x11a   : > { %v278_v33 = vpop.xlane.xlu1 %277  ;;  %283 = vst.msk [vmem:[%s199_s6] sm:$0xff] %vm282_vm1, %v272_v32 }
 0x11b   : > { %285 = vst.msk [vmem:[%s199_s6 + $0x10] sm:$0xff] %vm282_vm1, %v278_v33 }
 0x121   : > { %v275_v34 = vpop.xlane.xlu0 %274 }
 0x122   : > { %284 = vst.msk [vmem:[%s199_s6 + $0x8] sm:$0xff] %vm282_vm1, %v275_v34  ;;  %v281_v35 = vpop.xlane.xlu1 %280 }
 0x123   : > { %286 = vst.msk [vmem:[%s199_s6 + $0x18] sm:$0xff] %vm282_vm1, %v281_v35 }
 0x124 PF: > { %s14_s15 = sadd.s32 1, %s392_s15  }
 0x125   : > { %p11_p4 = scmp.ge.s32.totalorder %s14_s15, 4  }
 0x127   :  { %13 = sbr.rel (!%p11_p4) target bundleno = 1 (0x1), region = 66 }

</bundles_post_ra>
